<compile_context>
chip_gen: v5e
topology: v5e:2x2
jax: 0.10.0
libtpu: 0.0.40
codegen_flags: <defaults>
</compile_context>

<pallas_src>
import functools
import math
import warnings

import jax
import jax.numpy as jnp
from jax.experimental import pallas as pl
from jax.experimental.pallas import tpu as pltpu


def _round_up(x, m):
    return ((x + m - 1) // m) * m


def _cdiv(a, b):
    return -(-a // b)


def _pad2(rows, cols, itemsize):
    """Bytes of a 2-D VMEM/HBM tile with sublane/lane padding applied."""
    sub = 8 if itemsize >= 4 else (8 * 4) // itemsize   # f32 -> 8, bf16 -> 16
    return _round_up(rows, sub) * _round_up(cols, 128) * itemsize


def _choose_fold(num_basis, emb_dim, num_types):
    """Edges folded per lane-dense row.

    Smallest F with F*emb_dim % 128 == 0 (lane-dense output) and, if it keeps
    the block-diagonal tables / one-hot width bounded, also
    F*num_basis % 128 == 0 (lane-dense basis input).
    """
    f_out = 128 // math.gcd(emb_dim, 128)
    f_in = 128 // math.gcd(num_basis, 128)
    F = f_out * f_in // math.gcd(f_out, f_in)          # lcm: both streams dense
    if F > 64 or F * 2 * num_types > 1024:
        F = f_out
    if F > 64 or F * 2 * num_types > 1024:
        F = 1
    return max(F, 1)


def make_product_type_tables(w, type_embeddings, fold, dtype=jnp.float32):
    """Parameter-only tables (build once, outside the per-step jit).

    Returns:
      w_fold : (F*B, F*D)   block-diagonal basis projection, dtype `dtype`
      t_fold : (F*2T, F*D)  block-diagonal type-embedding table, dtype `dtype`
      expand : (2F+1, F*2T) f32 one-hot "router": broadcasts each folded edge's
               local type index to its 2T-column block and subtracts the local
               column offset, so the kernel's one-hot is a single compare-to-0.
    """
    B, D = w.shape
    T = type_embeddings.shape[1]
    half = D // 2
    F = fold
    nt2 = 2 * T
    K = F * nt2

    eye_f = jnp.eye(F, dtype=jnp.float32)
    w_fold = jnp.kron(eye_f, w.astype(jnp.float32)).astype(dtype)       # (F*B, F*D)

    t_base = jnp.zeros((nt2, D), jnp.float32)
    t_base = t_base.at[:T, :half].set(type_embeddings[0].astype(jnp.float32))
    t_base = t_base.at[T:, half:].set(type_embeddings[1].astype(jnp.float32))
    t_fold = jnp.kron(eye_f, t_base).astype(dtype)                      # (K, F*D)

    col = jnp.arange(K)
    blk = col // nt2                       # which folded edge owns this column
    loc = col % nt2                        # local column offset within the block
    row_for_col = jnp.where(loc >= T, F + blk, blk)
    expand = (jnp.arange(2 * F)[:, None] == row_for_col[None, :]).astype(jnp.float32)
    expand = jnp.concatenate([expand, -loc[None, :].astype(jnp.float32)], axis=0)
    return w_fold, t_fold, expand


def _edge_embed_kernel(basis_ref, idxv_ref, w_ref, t_ref, exp_ref, out_ref):
    # basis_ref: (tile_g, F*B)   f32  folded radial edge embedding tile (lane dense)
    # idxv_ref:  (tile_g, 2F+1)  f32  [center types | T+neighbor types | 1.0]
    # w_ref:     (F*B, F*D)           block-diagonal basis weight (VMEM resident)
    # t_ref:     (F*2T, F*D)          block-diagonal type table   (VMEM resident)
    # exp_ref:   (2F+1, F*2T)    f32  one-hot router              (VMEM resident)
    # out_ref:   (tile_g, F*D)        lane-dense output tile
    mm_dtype = w_ref.dtype     # float32 (exact, default) or bfloat16 (opt-in)

    # (1) Radial-basis projection on the MXU.
    basis_proj = jnp.dot(basis_ref[...].astype(mm_dtype), w_ref[...],
                         preferred_element_type=jnp.float32)

    # (2) One-hot built with one tiny MXU matmul + one VPU compare.
    #     vdiff[g, c] = (local type index routed to column c) - (c mod 2T);
    #     all operands are small exact integers -> exact at any MXU precision.
    vdiff = jnp.dot(idxv_ref[...], exp_ref[...], preferred_element_type=jnp.float32)
    sel = (vdiff == 0.0).astype(mm_dtype)

    # (3) Fused type-embedding gather: one-hot @ resident block-diagonal table.
    type_embed = jnp.dot(sel, t_ref[...], preferred_element_type=jnp.float32)

    # (4) Elementwise product kept in f32 (v5e VPU has no bf16 path); one
    #     lane-dense store.
    out_ref[...] = (type_embed * basis_proj).astype(out_ref.dtype)


def product_type_embedding(
    edge_embedding,    # (E, num_basis) float — radial edge embedding
    w,                 # (num_basis, D) float — basis_mlp weight (linear, no bias)
    type_embeddings,   # (2, num_types, D // 2) float
    edge_index,        # (2, E) int
    atom_types,        # (num_atoms, 1) or (num_atoms,) int
    *,
    tables=None,       # optional prebuilt (w_fold, t_fold, expand)
    tile_e=32768,      # edges per grid step (kernel is HBM/overhead bound)
    out_dtype=None,    # e.g. jnp.bfloat16 to halve the dominant output stream
    mxu_dtype=None,    # table dtype when tables are built here (f32 default)
):
    E, B = edge_embedding.shape
    D = w.shape[1]
    T = type_embeddings.shape[1]
    assert D % 2 == 0
    if out_dtype is None:
        out_dtype = edge_embedding.dtype
    out_isz = jnp.dtype(out_dtype).itemsize

    if tables is None:
        F = _choose_fold(B, D, T)
        tables = make_product_type_tables(
            w, type_embeddings, F, dtype=(mxu_dtype or jnp.float32))
    w_fold, t_fold, expand = tables
    F = w_fold.shape[0] // B
    nt2 = 2 * T
    K = F * nt2
    FB, FD = F * B, F * D
    assert w_fold.shape == (FB, FD)
    assert t_fold.shape == (K, FD)
    assert expand.shape == (2 * F + 1, K)
    tbl_isz = jnp.dtype(w_fold.dtype).itemsize

    if FD % 128 != 0:
        warnings.warn(
            "ProductTypeEmbedding: folded feature dim %d is not a multiple of "
            "128; output stores will be lane-masked (correct but slower)." % FD)

    # ---- per-edge type indices (cheap int glue in plain JAX) ----------------
    at = atom_types.reshape(-1).astype(jnp.int32)
    et = jnp.take(at, edge_index.reshape(-1).astype(jnp.int32), axis=0).reshape(2, E)
    center_t, neighbor_t = et[0], et[1]

    # ---- choose folded-row tile: >=2 grid steps when possible (v7x 2 cores),
    #      honest padded VMEM accounting with automatic shrink ----------------
    G_need = _cdiv(E, F)
    min_rows = 8 if out_isz >= 4 else 16
    target_g = max(min_rows, tile_e // F)
    tile_g = min(target_g, _round_up(_cdiv(G_need, 2), min_rows))
    tile_g = max(min_rows, _round_up(tile_g, min_rows))

    def vmem_bytes(tg):
        return (2 * (_pad2(tg, FB, 4) + _pad2(tg, 2 * F + 1, 4)
                     + _pad2(FB, FD, tbl_isz) + _pad2(K, FD, tbl_isz)
                     + _pad2(2 * F + 1, K, 4) + _pad2(tg, FD, out_isz))
                + 2 * _pad2(tg, FD, 4)      # basis_proj / type_embed temporaries
                + 2 * _pad2(tg, K, 4))      # vdiff / sel temporaries

    while vmem_bytes(tile_g) > (40 << 20) and tile_g > min_rows:
        tile_g = max(min_rows, _round_up(tile_g // 2, min_rows))

    G = _round_up(G_need, tile_g)
    E_pad = G * F
    pad = E_pad - E

    basis = edge_embedding.astype(jnp.float32)
    if pad:
        basis = jnp.pad(basis, ((0, pad), (0, 0)))
        center_t = jnp.pad(center_t, (0, pad))
        neighbor_t = jnp.pad(neighbor_t, (0, pad))

    # Lane-dense folded views: F consecutive edges share one row.  Row-major
    # reshapes; padded rows (zero basis) produce zeros that are sliced off.
    basis_fold = basis.reshape(G, FB)
    idxv = jnp.concatenate(
        [center_t.astype(jnp.float32).reshape(G, F),
         (neighbor_t + T).astype(jnp.float32).reshape(G, F),
         jnp.ones((G, 1), jnp.float32)],
        axis=1)                                                   # (G, 2F+1)

    grid = (G // tile_g,)

    flops = 2 * G * (FB * FD + (2 * F + 1) * K + K * FD)
    bytes_accessed = (_pad2(G, FB, 4) + _pad2(G, 2 * F + 1, 4)
                      + _pad2(FB, FD, tbl_isz) + _pad2(K, FD, tbl_isz)
                      + _pad2(2 * F + 1, K, 4) + _pad2(G, FD, out_isz))
    cost = pl.CostEstimate(flops=flops, transcendentals=0,
                           bytes_accessed=bytes_accessed)
    vmem_limit = int(min(48 << 20, max(32 << 20, vmem_bytes(tile_g) + (8 << 20))))

    out_fold = pl.pallas_call(
        _edge_embed_kernel,
        out_shape=jax.ShapeDtypeStruct((G, FD), out_dtype),
        grid_spec=pltpu.PrefetchScalarGridSpec(
            num_scalar_prefetch=0,
            grid=grid,
            in_specs=[
                pl.BlockSpec((tile_g, FB), lambda i: (i, 0)),
                pl.BlockSpec((tile_g, 2 * F + 1), lambda i: (i, 0)),
                pl.BlockSpec((FB, FD), lambda i: (0, 0)),        # fetched once
                pl.BlockSpec((K, FD), lambda i: (0, 0)),         # fetched once
                pl.BlockSpec((2 * F + 1, K), lambda i: (0, 0)),  # fetched once
            ],
            out_specs=pl.BlockSpec((tile_g, FD), lambda i: (i, 0)),
        ),
        compiler_params=pltpu.CompilerParams(
            dimension_semantics=("parallel",),
            vmem_limit_bytes=vmem_limit,
        ),
        cost_estimate=cost,
    )(basis_fold, idxv, w_fold, t_fold, expand)

    # Unfold back to (E, D); callers able to consume the folded (G, F*D) layout
    # directly can skip this reshape.
    out = out_fold.reshape(E_pad, D)
    if pad:
        out = out[:E]
    return out


if __name__ == "__main__":
    # Small, deterministic problem setup consistent with the module.
    num_types = 4
    num_atoms = 10
    num_edges = 250                       # deliberately NOT a multiple of the tile
    num_basis = 8                         # irreps_in[EDGE_EMBEDDING].num_irreps
    initial_scalar_embedding_dim = 32     # D (must be even)

    key = jax.random.PRNGKey(0)
    k0, k1, k2, k3, k4 = jax.random.split(key, 5)

    # Parameters (deterministic synthetic init, matching __init__ shapes).
    # TODO(synk): ScalarMLPFunction's exact weight init/normalization is not
    # reproduced bit-for-bit; a plain linear projection (no bias) matches the
    # default (no hidden layers, no nonlinearity) semantics.
    type_embeddings = jax.random.normal(
        k0, (2, num_types, initial_scalar_embedding_dim // 2), dtype=jnp.float32)
    w = jax.random.normal(
        k1, (num_basis, initial_scalar_embedding_dim), dtype=jnp.float32
    ) / jnp.sqrt(jnp.float32(num_basis))

    # Inputs.
    edge_embedding = jax.random.normal(k2, (num_edges, num_basis), dtype=jnp.float32)
    atom_types = jax.random.randint(k3, (num_atoms, 1), 0, num_types, dtype=jnp.int32)
    edge_index = jax.random.randint(k4, (2, num_edges), 0, num_atoms, dtype=jnp.int32)

    # Parameter-only tables hoisted out of the per-call jit (built once here).
    F = _choose_fold(num_basis, initial_scalar_embedding_dim, num_types)
    tables_f32 = make_product_type_tables(w, type_embeddings, F, dtype=jnp.float32)

    fn = jax.jit(functools.partial(product_type_embedding, tile_e=32768))
    out = fn(edge_embedding, w, type_embeddings, edge_index, atom_types,
             tables=tables_f32)
    out = jax.block_until_ready(out)

    # Pure-JAX reference (gather + concat + linear + elementwise product).
    at = atom_types.reshape(-1)
    et = jnp.take(at, edge_index.reshape(-1), axis=0).reshape(2, -1)
    ce = jnp.take(type_embeddings[0], et[0], axis=0)
    ne = jnp.take(type_embeddings[1], et[1], axis=0)
    ref = jnp.concatenate([ce, ne], axis=-1) * (edge_embedding @ w)

    assert out.shape == (num_edges, initial_scalar_embedding_dim)
    assert jnp.allclose(out, ref, atol=1e-4, rtol=1e-4), "mismatch vs reference (f32)"

    # Optional low-precision fast path (bf16 output + bf16 tables): halves the
    # dominant output HBM stream and uses single-pass bf16 MXU matmuls.
    tables_bf16 = make_product_type_tables(w, type_embeddings, F, dtype=jnp.bfloat16)
    fn16 = jax.jit(functools.partial(product_type_embedding,
                                     tile_e=32768, out_dtype=jnp.bfloat16))
    out16 = fn16(edge_embedding, w, type_embeddings, edge_index, atom_types,
                 tables=tables_bf16)
    out16 = jax.block_until_ready(out16)
    assert out16.dtype == jnp.bfloat16
    assert jnp.allclose(out16.astype(jnp.float32), ref, atol=5e-2, rtol=5e-2), \
        "mismatch vs reference (bf16)"

    print("KERNEL_OK")
</pallas_src>

<mosaic_0001>
module attributes {stable_mosaic.version = 11 : i64} {
  func.func @_edge_embed_kernel(%arg0: i32, %arg1: memref<8x128xf32, #tpu.memory_space<vmem>>, %arg2: memref<8x33xf32, #tpu.memory_space<vmem>>, %arg3: memref<128x512xf32, #tpu.memory_space<vmem>>, %arg4: memref<128x512xf32, #tpu.memory_space<vmem>>, %arg5: memref<33x128xf32, #tpu.memory_space<vmem>>, %arg6: memref<8x512xf32, #tpu.memory_space<vmem>>) attributes {dimension_semantics = [#tpu.dimension_semantics<parallel>], iteration_bounds = array<i64: 2>, scalar_prefetch = 0 : i64, scratch_operands = 0 : i64, tpu.core_type = #tpu.core_type<tc>, window_params = [{transform_indices = @transform_0, window_bounds = array<i64: 8, 128>}, {transform_indices = @transform_1, window_bounds = array<i64: 8, 33>}, {pipeline_mode = #tpu.pipeline_mode<synchronous>, transform_indices = @transform_2, window_bounds = array<i64: 128, 512>}, {pipeline_mode = #tpu.pipeline_mode<synchronous>, transform_indices = @transform_3, window_bounds = array<i64: 128, 512>}, {pipeline_mode = #tpu.pipeline_mode<synchronous>, transform_indices = @transform_4, window_bounds = array<i64: 33, 128>}, {transform_indices = @transform_5, window_bounds = array<i64: 8, 512>}]} {
    %c0 = arith.constant 0 : index
    %c0_0 = arith.constant 0 : index
    %0 = vector.load %arg1[%c0, %c0_0] : memref<8x128xf32, #tpu.memory_space<vmem>>, vector<8x128xf32>
    %c0_1 = arith.constant 0 : index
    %c0_2 = arith.constant 0 : index
    %1 = vector.load %arg3[%c0_1, %c0_2] : memref<128x512xf32, #tpu.memory_space<vmem>>, vector<128x512xf32>
    %cst = arith.constant dense<0.000000e+00> : vector<8x512xf32>
    %2 = tpu.matmul %0, %1, %cst {dimension_numbers = #tpu.dot_dimension_numbers<[1], [0], [0], [1], [0, 0, 1, 1], [], []>} : vector<8x128xf32>, vector<128x512xf32>, vector<8x512xf32> -> vector<8x512xf32>
    %c0_3 = arith.constant 0 : index
    %c0_4 = arith.constant 0 : index
    %3 = vector.load %arg2[%c0_3, %c0_4] : memref<8x33xf32, #tpu.memory_space<vmem>>, vector<8x33xf32>
    %c0_5 = arith.constant 0 : index
    %c0_6 = arith.constant 0 : index
    %4 = vector.load %arg5[%c0_5, %c0_6] : memref<33x128xf32, #tpu.memory_space<vmem>>, vector<33x128xf32>
    %cst_7 = arith.constant dense<0.000000e+00> : vector<8x128xf32>
    %5 = tpu.matmul %3, %4, %cst_7 {dimension_numbers = #tpu.dot_dimension_numbers<[1], [0], [0], [1], [0, 0, 1, 1], [], []>} : vector<8x33xf32>, vector<33x128xf32>, vector<8x128xf32> -> vector<8x128xf32>
    %cst_8 = arith.constant 0.000000e+00 : f32
    %6 = vector.broadcast %cst_8 : f32 to vector<8x128xf32>
    %7 = arith.cmpf oeq, %5, %6 : vector<8x128xf32>
    %8 = arith.extui %7 : vector<8x128xi1> to vector<8x128xi32>
    %9 = arith.sitofp %8 : vector<8x128xi32> to vector<8x128xf32>
    %c0_9 = arith.constant 0 : index
    %c0_10 = arith.constant 0 : index
    %10 = vector.load %arg4[%c0_9, %c0_10] : memref<128x512xf32, #tpu.memory_space<vmem>>, vector<128x512xf32>
    %cst_11 = arith.constant dense<0.000000e+00> : vector<8x512xf32>
    %11 = tpu.matmul %9, %10, %cst_11 {dimension_numbers = #tpu.dot_dimension_numbers<[1], [0], [0], [1], [0, 0, 1, 1], [], []>} : vector<8x128xf32>, vector<128x512xf32>, vector<8x512xf32> -> vector<8x512xf32>
    %12 = arith.mulf %11, %2 : vector<8x512xf32>
    %c0_12 = arith.constant 0 : index
    %c0_13 = arith.constant 0 : index
    %13 = vector.load %arg6[%c0_12, %c0_13] : memref<8x512xf32, #tpu.memory_space<vmem>>, vector<8x512xf32>
    tpu.vector_store %arg6[%c0_12, %c0_13], %12 {strides = array<i32>} : memref<8x512xf32, #tpu.memory_space<vmem>>, vector<8x512xf32>,
    return
  }
  func.func @transform_0(%arg0: i32) -> (i32, i32) {
    %c0_i32 = arith.constant 0 : i32
    %c0_i32_0 = arith.constant 0 : i32
    return %arg0, %c0_i32 : i32, i32
  }
  func.func @transform_1(%arg0: i32) -> (i32, i32) {
    %c0_i32 = arith.constant 0 : i32
    %c0_i32_0 = arith.constant 0 : i32
    return %arg0, %c0_i32 : i32, i32
  }
  func.func @transform_2(%arg0: i32) -> (i32, i32) {
    %c0_i32 = arith.constant 0 : i32
    %c0_i32_0 = arith.constant 0 : i32
    %c0_i32_1 = arith.constant 0 : i32
    return %c0_i32, %c0_i32_0 : i32, i32
  }
  func.func @transform_3(%arg0: i32) -> (i32, i32) {
    %c0_i32 = arith.constant 0 : i32
    %c0_i32_0 = arith.constant 0 : i32
    %c0_i32_1 = arith.constant 0 : i32
    return %c0_i32, %c0_i32_0 : i32, i32
  }
  func.func @transform_4(%arg0: i32) -> (i32, i32) {
    %c0_i32 = arith.constant 0 : i32
    %c0_i32_0 = arith.constant 0 : i32
    %c0_i32_1 = arith.constant 0 : i32
    return %c0_i32, %c0_i32_0 : i32, i32
  }
  func.func @transform_5(%arg0: i32) -> (i32, i32) {
    %c0_i32 = arith.constant 0 : i32
    %c0_i32_0 = arith.constant 0 : i32
    return %arg0, %c0_i32 : i32, i32
  }
}

</mosaic_0001>

<bundles_post_ra>
// kernel: product_type_embedding.1
= control target key start
LH: loop header
LB: loop body
LE: loop exit
PB: predicated region body
PF: predicated region fallthrough
CT: control target
= control target key end

     0   :  { %s707_s18 = smov 0   ;;  %s1150_s0 = inlined_call_operand.vmem [shape: f32[16,128], index: 0, kind: input, shape index: {}]   ;;  %s1151_s1 = inlined_call_operand.vmem [shape: f32[16,33], index: 1, kind: input, shape index: {}]   ;;  %s1152_s2 = inlined_call_operand.vmem [shape: f32[128,512], index: 2, kind: input, shape index: {}]   ;;  %s1153_s3 = inlined_call_operand.vmem [shape: f32[128,512], index: 3, kind: input, shape index: {}]   ;;  %s1154_s4 = inlined_call_operand.vmem [shape: f32[33,128], index: 4, kind: input, shape index: {}]   ;;  %s1155_s5 = inlined_call_operand.vmem [shape: f32[16,512], index: 5, kind: output, shape index: {}]  }
   0x1 LB: > { %s640_s19 = sadd.s32 4294967295, %s674_s18   ;;  %p644_p0 = scmp.ge.s32.totalorder %s674_s18, 1  ;;  %s674_s18 = sphi %s707_s18, %s15_s18  }
   0x2   : > { %p195_p1 = scmp.lt.s32.totalorder %s674_s18, 3 }
   0x4   : > { %p196_p2 = pnand %p644_p0, %p195_p1 }
   0x5   : > { %p789_p3 = scmp.lt.s32.totalorder (!%p196_p2), %s640_s19, 1 }
   0x6   : > { %199 = sbr.rel (%p196_p2) target bundleno = 316 (0x13c), region = 40 }
   0xb   : > { %v300_v0 = vld [vmem:[%s1152_s2 + $0x1e0] sm:$0xff]  ;;  %v301_v7 = vld [vmem:[%s1152_s2 + $0x1e8] sm:$0xff]  ;;  %v302_v8 = vld [vmem:[%s1152_s2 + $0x1f0] sm:$0xff]  ;;  %s1158_s19 = smov (!%p789_p3, %s640_s19), 1  ;;  %vm394_vm0 = vcmask 1040384   ;;  %vm390_vm1 = vcmask 269312  }
   0xc   : > { %v296_v1 = vld [vmem:[%s1152_s2 + $0x1c0] sm:$0xff]  ;;  %304 = vmatpush.msra.mxu0 %v300_v0  ;;  %v303_v9 = vld [vmem:[%s1152_s2 + $0x1f8] sm:$0xff]  ;;  %324 = vmatpush.msra.mxu1 %v301_v7  ;;  %v297_v10 = vld [vmem:[%s1152_s2 + $0x1c8] sm:$0xff]  ;;  %s645_s7 = sshll.u32 %s1158_s19, 3  ;;  %s658_s20 = sshll.u32 %s1158_s19, 5 }
   0xd   : > { %v292_v2 = vld [vmem:[%s1152_s2 + $0x1a0] sm:$0xff]  ;;  %344 = vmatpush.msra.mxu2 %v302_v8  ;;  %v298_v11 = vld [vmem:[%s1152_s2 + $0x1d0] sm:$0xff]  ;;  %v299_v12 = vld [vmem:[%s1152_s2 + $0x1d8] sm:$0xff]  ;;  %364 = vmatpush.msra.mxu3 %v303_v9  ;;  %s229_s22 = scalar_lea.vmem %s1150_s0, %s645_s7  ;;  %s233_s11 = scalar_lea.vmem %s1151_s1, %s645_s7 }
   0xe   : > { %305 = vmatpush.msra.mxu0 %v296_v1  ;;  %v288_v3 = vld [vmem:[%s1152_s2 + $0x180] sm:$0xff]  ;;  %v293_v13 = vld [vmem:[%s1152_s2 + $0x1a8] sm:$0xff]  ;;  %v294_v14 = vld [vmem:[%s1152_s2 + $0x1b0] sm:$0xff]  ;;  %325 = vmatpush.msra.mxu1 %v297_v10 }
   0xf   : > { %v284_v4 = vld [vmem:[%s1152_s2 + $0x160] sm:$0xff]  ;;  %345 = vmatpush.msra.mxu2 %v298_v11  ;;  %v295_v16 = vld [vmem:[%s1152_s2 + $0x1b8] sm:$0xff]  ;;  %365 = vmatpush.msra.mxu3 %v299_v12  ;;  %v289_v17 = vld [vmem:[%s1152_s2 + $0x188] sm:$0xff] }
  0x10   : > { %306 = vmatpush.msra.mxu0 %v292_v2  ;;  %v280_v5 = vld [vmem:[%s1152_s2 + $0x140] sm:$0xff]  ;;  %v290_v18 = vld [vmem:[%s1152_s2 + $0x190] sm:$0xff]  ;;  %326 = vmatpush.msra.mxu1 %v293_v13  ;;  %v291_v20 = vld [vmem:[%s1152_s2 + $0x198] sm:$0xff] }
  0x11   : > { %v276_v6 = vld [vmem:[%s1152_s2 + $0x120] sm:$0xff]  ;;  %346 = vmatpush.msra.mxu2 %v294_v14  ;;  %366 = vmatpush.msra.mxu3 %v295_v16  ;;  %v285_v21 = vld [vmem:[%s1152_s2 + $0x168] sm:$0xff]  ;;  %v286_v22 = vld [vmem:[%s1152_s2 + $0x170] sm:$0xff] }
  0x12   : > { %307 = vmatpush.msra.mxu0 %v288_v3  ;;  %v272_v15 = vld [vmem:[%s1152_s2 + $0x100] sm:$0xff]  ;;  %327 = vmatpush.msra.mxu1 %v289_v17  ;;  %v287_v24 = vld [vmem:[%s1152_s2 + $0x178] sm:$0xff]  ;;  %v281_v25 = vld [vmem:[%s1152_s2 + $0x148] sm:$0xff] }
  0x13   : > { %v268_v19 = vld [vmem:[%s1152_s2 + $0xe0] sm:$0xff]  ;;  %347 = vmatpush.msra.mxu2 %v290_v18  ;;  %367 = vmatpush.msra.mxu3 %v291_v20  ;;  %v282_v26 = vld [vmem:[%s1152_s2 + $0x150] sm:$0xff]  ;;  %v283_v28 = vld [vmem:[%s1152_s2 + $0x158] sm:$0xff] }
  0x14   : > { %308 = vmatpush.msra.mxu0 %v284_v4  ;;  %v264_v23 = vld [vmem:[%s1152_s2 + $0xc0] sm:$0xff]  ;;  %328 = vmatpush.msra.mxu1 %v285_v21  ;;  %v277_v29 = vld [vmem:[%s1152_s2 + $0x128] sm:$0xff]  ;;  %v278_v30 = vld [vmem:[%s1152_s2 + $0x130] sm:$0xff] }
  0x15   : > { %v260_v27 = vld [vmem:[%s1152_s2 + $0xa0] sm:$0xff]  ;;  %348 = vmatpush.msra.mxu2 %v286_v22  ;;  %368 = vmatpush.msra.mxu3 %v287_v24  ;;  %v279_v32 = vld [vmem:[%s1152_s2 + $0x138] sm:$0xff]  ;;  %v273_v33 = vld [vmem:[%s1152_s2 + $0x108] sm:$0xff] }
  0x16   : > { %309 = vmatpush.msra.mxu0 %v280_v5  ;;  %v256_v31 = vld [vmem:[%s1152_s2 + $0x80] sm:$0xff]  ;;  %329 = vmatpush.msra.mxu1 %v281_v25  ;;  %v274_v34 = vld [vmem:[%s1152_s2 + $0x110] sm:$0xff]  ;;  %v275_v36 = vld [vmem:[%s1152_s2 + $0x118] sm:$0xff] }
  0x17   : > { %349 = vmatpush.msra.mxu2 %v282_v26  ;;  %369 = vmatpush.msra.mxu3 %v283_v28  ;;  %v252_v35 = vld [vmem:[%s1152_s2 + $0x60] sm:$0xff]  ;;  %v269_v37 = vld [vmem:[%s1152_s2 + $0xe8] sm:$0xff]  ;;  %v270_v38 = vld [vmem:[%s1152_s2 + $0xf0] sm:$0xff] }
  0x18   : > { %310 = vmatpush.msra.mxu0 %v276_v6  ;;  %330 = vmatpush.msra.mxu1 %v277_v29  ;;  %v248_v39 = vld [vmem:[%s1152_s2 + $0x40] sm:$0xff]  ;;  %v271_v40 = vld [vmem:[%s1152_s2 + $0xf8] sm:$0xff]  ;;  %v265_v41 = vld [vmem:[%s1152_s2 + $0xc8] sm:$0xff] }
  0x19   : > { %350 = vmatpush.msra.mxu2 %v278_v30  ;;  %370 = vmatpush.msra.mxu3 %v279_v32  ;;  %v266_v42 = vld [vmem:[%s1152_s2 + $0xd0] sm:$0xff]  ;;  %v244_v43 = vld [vmem:[%s1152_s2 + $0x20] sm:$0xff]  ;;  %v267_v44 = vld [vmem:[%s1152_s2 + $0xd8] sm:$0xff] }
  0x1a   : > { %311 = vmatpush.msra.mxu0 %v272_v15  ;;  %331 = vmatpush.msra.mxu1 %v273_v33  ;;  %v261_v45 = vld [vmem:[%s1152_s2 + $0xa8] sm:$0xff]  ;;  %v262_v46 = vld [vmem:[%s1152_s2 + $0xb0] sm:$0xff]  ;;  %v240_v47 = vld [vmem:[%s1152_s2] sm:$0xff] }
  0x1b   : > { %351 = vmatpush.msra.mxu2 %v274_v34  ;;  %371 = vmatpush.msra.mxu3 %v275_v36  ;;  %v263_v48 = vld [vmem:[%s1152_s2 + $0xb8] sm:$0xff]  ;;  %v389_v49 = vld [vmem:[%s1154_s4 + $0x20] sm:$0x1]  ;;  %v257_v50 = vld [vmem:[%s1152_s2 + $0x88] sm:$0xff] }
  0x1c   : > { %312 = vmatpush.msra.mxu0 %v268_v19  ;;  %332 = vmatpush.msra.mxu1 %v269_v37  ;;  %v886_v51 = vld [vmem:[%s229_s22] sm:$0xff]  ;;  %v258_v52 = vld [vmem:[%s1152_s2 + $0x90] sm:$0xff]  ;;  %v388_v53 = vld [vmem:[%s1154_s4 + $0x18] sm:$0xff]  ;;  %s238_s22 = scalar_lea.vmem %s1155_s5, %s658_s20 }
  0x1d   : > { %352 = vmatpush.msra.mxu2 %v270_v38  ;;  %372 = vmatpush.msra.mxu3 %v271_v40  ;;  %v259_v54 = vld [vmem:[%s1152_s2 + $0x98] sm:$0xff]  ;;  %v253_v55 = vld [vmem:[%s1152_s2 + $0x68] sm:$0xff]  ;;  %v254_v56 = vld [vmem:[%s1152_s2 + $0x70] sm:$0xff] }
  0x1e   : > { %313 = vmatpush.msra.mxu0 %v264_v23  ;;  %333 = vmatpush.msra.mxu1 %v265_v41  ;;  %v387_v57 = vld [vmem:[%s1154_s4 + $0x10] sm:$0xff]  ;;  %v255_v58 = vld [vmem:[%s1152_s2 + $0x78] sm:$0xff]  ;;  %v249_v59 = vld [vmem:[%s1152_s2 + $0x48] sm:$0xff] }
  0x1f   : > { %353 = vmatpush.msra.mxu2 %v266_v42  ;;  %373 = vmatpush.msra.mxu3 %v267_v44  ;;  %v250_v60 = vld [vmem:[%s1152_s2 + $0x50] sm:$0xff]  ;;  %v386_v61 = vld [vmem:[%s1154_s4 + $0x8] sm:$0xff]  ;;  %v251_v62 = vld [vmem:[%s1152_s2 + $0x58] sm:$0xff] }
  0x20   : > { %314 = vmatpush.msra.mxu0 %v260_v27  ;;  %334 = vmatpush.msra.mxu1 %v261_v45  ;;  %v245_v63 = vld [vmem:[%s1152_s2 + $0x28] sm:$0xff]  ;;  %v246_v0 = vld [vmem:[%s1152_s2 + $0x30] sm:$0xff]  ;;  %v385_v1 = vld [vmem:[%s1154_s4] sm:$0xff] }
  0x21   : > { %354 = vmatpush.msra.mxu2 %v262_v46  ;;  %374 = vmatpush.msra.mxu3 %v263_v48  ;;  %v247_v2 = vld [vmem:[%s1152_s2 + $0x38] sm:$0xff]  ;;  %v384_v3 = vld [vmem:[%s233_s11] sm:$0xff]  ;;  %v241_v4 = vld [vmem:[%s1152_s2 + $0x8] sm:$0xff] }
  0x22   : > { %315 = vmatpush.msra.mxu0 %v256_v31  ;;  %335 = vmatpush.msra.mxu1 %v257_v50  ;;  %v242_v5 = vld [vmem:[%s1152_s2 + $0x10] sm:$0xff]  ;;  %v243_v6 = vld [vmem:[%s1152_s2 + $0x18] sm:$0xff]  ;;  %v481_v7 = vld [vmem:[%s1153_s3 + $0x1e0] sm:$0xff] }
  0x23   : > { %355 = vmatpush.msra.mxu2 %v258_v52  ;;  %375 = vmatpush.msra.mxu3 %v259_v54  ;;  %v482_v8 = vld [vmem:[%s1153_s3 + $0x1e8] sm:$0xff]  ;;  %v483_v9 = vld [vmem:[%s1153_s3 + $0x1f0] sm:$0xff]  ;;  %v484_v10 = vld [vmem:[%s1153_s3 + $0x1f8] sm:$0xff] }
  0x24   : > { %316 = vmatpush.msra.mxu0 %v252_v35  ;;  %336 = vmatpush.msra.mxu1 %v253_v55  ;;  %v477_v11 = vld [vmem:[%s1153_s3 + $0x1c0] sm:$0xff]  ;;  %v478_v12 = vld [vmem:[%s1153_s3 + $0x1c8] sm:$0xff]  ;;  %v479_v13 = vld [vmem:[%s1153_s3 + $0x1d0] sm:$0xff] }
  0x25   : > { %356 = vmatpush.msra.mxu2 %v254_v56  ;;  %376 = vmatpush.msra.mxu3 %v255_v58  ;;  %v480_v14 = vld [vmem:[%s1153_s3 + $0x1d8] sm:$0xff]  ;;  %v473_v15 = vld [vmem:[%s1153_s3 + $0x1a0] sm:$0xff]  ;;  %v474_v16 = vld [vmem:[%s1153_s3 + $0x1a8] sm:$0xff] }
  0x26   : > { %317 = vmatpush.msra.mxu0 %v248_v39  ;;  %337 = vmatpush.msra.mxu1 %v249_v59  ;;  %v475_v17 = vld [vmem:[%s1153_s3 + $0x1b0] sm:$0xff]  ;;  %v476_v18 = vld [vmem:[%s1153_s3 + $0x1b8] sm:$0xff]  ;;  %v469_v19 = vld [vmem:[%s1153_s3 + $0x180] sm:$0xff] }
  0x27   : > { %357 = vmatpush.msra.mxu2 %v250_v60  ;;  %377 = vmatpush.msra.mxu3 %v251_v62  ;;  %v470_v20 = vld [vmem:[%s1153_s3 + $0x188] sm:$0xff]  ;;  %v471_v21 = vld [vmem:[%s1153_s3 + $0x190] sm:$0xff]  ;;  %v472_v22 = vld [vmem:[%s1153_s3 + $0x198] sm:$0xff] }
  0x28   : > { %318 = vmatpush.msra.mxu0 %v244_v43  ;;  %338 = vmatpush.msra.mxu1 %v245_v63  ;;  %v465_v23 = vld [vmem:[%s1153_s3 + $0x160] sm:$0xff]  ;;  %v466_v24 = vld [vmem:[%s1153_s3 + $0x168] sm:$0xff]  ;;  %v467_v25 = vld [vmem:[%s1153_s3 + $0x170] sm:$0xff] }
  0x29   : > { %358 = vmatpush.msra.mxu2 %v246_v0  ;;  %378 = vmatpush.msra.mxu3 %v247_v2  ;;  %v468_v26 = vld [vmem:[%s1153_s3 + $0x178] sm:$0xff]  ;;  %v461_v27 = vld [vmem:[%s1153_s3 + $0x140] sm:$0xff]  ;;  %v462_v28 = vld [vmem:[%s1153_s3 + $0x148] sm:$0xff] }
  0x2a   : > { %319 = vmatpush.msra.mxu0 %v240_v47  ;;  %339 = vmatpush.msra.mxu1 %v241_v4  ;;  %v463_v29 = vld [vmem:[%s1153_s3 + $0x150] sm:$0xff]  ;;  %v464_v30 = vld [vmem:[%s1153_s3 + $0x158] sm:$0xff]  ;;  %v457_v31 = vld [vmem:[%s1153_s3 + $0x120] sm:$0xff] }
  0x2b   : > { %320 = vmatmul.f32.vlgmr.msra.gmra.mxu0 %v886_v51  ;;  %359 = vmatpush.msra.mxu2 %v242_v5  ;;  %v458_v32 = vld [vmem:[%s1153_s3 + $0x128] sm:$0xff]  ;;  %v459_v33 = vld [vmem:[%s1153_s3 + $0x130] sm:$0xff]  ;;  %v460_v34 = vld [vmem:[%s1153_s3 + $0x138] sm:$0xff] }
  0x2c   : > { %649 = vmatpush.msk.msrb.mxu0 %vm394_vm0, %v389_v49  ;;  %379 = vmatpush.msra.mxu3 %v243_v6  ;;  %v453_v35 = vld [vmem:[%s1153_s3 + $0x100] sm:$0xff]  ;;  %v454_v36 = vld [vmem:[%s1153_s3 + $0x108] sm:$0xff]  ;;  %v455_v37 = vld [vmem:[%s1153_s3 + $0x110] sm:$0xff] }
  0x2d   : > { %485 = vmatpush.msrb.mxu1 %v481_v7  ;;  %505 = vmatpush.msrb.mxu2 %v482_v8  ;;  %v456_v38 = vld [vmem:[%s1153_s3 + $0x118] sm:$0xff]  ;;  %v449_v39 = vld [vmem:[%s1153_s3 + $0xe0] sm:$0xff]  ;;  %v450_v40 = vld [vmem:[%s1153_s3 + $0xe8] sm:$0xff] }
  0x2e   : > { %410 = vmatpush.msrb.mxu0 %v388_v53  ;;  %525 = vmatpush.msrb.mxu3 %v483_v9  ;;  %v451_v41 = vld [vmem:[%s1153_s3 + $0xf0] sm:$0xff]  ;;  %v452_v42 = vld [vmem:[%s1153_s3 + $0xf8] sm:$0xff]  ;;  %v445_v43 = vld [vmem:[%s1153_s3 + $0xc0] sm:$0xff]  ;;  %v676_v9 = vmov 1.0  }
  0x2f   : > { %486 = vmatpush.msrb.mxu1 %v477_v11  ;;  %506 = vmatpush.msrb.mxu2 %v478_v12  ;;  %v446_v44 = vld [vmem:[%s1153_s3 + $0xc8] sm:$0xff]  ;;  %v447_v45 = vld [vmem:[%s1153_s3 + $0xd0] sm:$0xff]  ;;  %v448_v46 = vld [vmem:[%s1153_s3 + $0xd8] sm:$0xff] }
  0x30   : > { %411 = vmatpush.msrb.mxu0 %v387_v57  ;;  %526 = vmatpush.msrb.mxu3 %v479_v13  ;;  %v441_v47 = vld [vmem:[%s1153_s3 + $0xa0] sm:$0xff]  ;;  %v442_v48 = vld [vmem:[%s1153_s3 + $0xa8] sm:$0xff]  ;;  %v443_v49 = vld [vmem:[%s1153_s3 + $0xb0] sm:$0xff] }
  0x31   : > { %487 = vmatpush.msrb.mxu1 %v473_v15  ;;  %507 = vmatpush.msrb.mxu2 %v474_v16  ;;  %v444_v50 = vld [vmem:[%s1153_s3 + $0xb8] sm:$0xff]  ;;  %v437_v52 = vld [vmem:[%s1153_s3 + $0x80] sm:$0xff]  ;;  %v438_v53 = vld [vmem:[%s1153_s3 + $0x88] sm:$0xff] }
  0x32   : > { %412 = vmatpush.msrb.mxu0 %v386_v61  ;;  %527 = vmatpush.msrb.mxu3 %v475_v17  ;;  %v439_v54 = vld [vmem:[%s1153_s3 + $0x90] sm:$0xff]  ;;  %v440_v55 = vld [vmem:[%s1153_s3 + $0x98] sm:$0xff]  ;;  %v434_v56 = vld [vmem:[%s1153_s3 + $0x68] sm:$0xff] }
  0x33   : > { %488 = vmatpush.msrb.mxu1 %v469_v19  ;;  %508 = vmatpush.msrb.mxu2 %v470_v20  ;;  %v435_v57 = vld [vmem:[%s1153_s3 + $0x70] sm:$0xff]  ;;  %v436_v58 = vld [vmem:[%s1153_s3 + $0x78] sm:$0xff]  ;;  %v429_v59 = vld [vmem:[%s1153_s3 + $0x40] sm:$0xff] }
  0x34   : > { %413 = vmatpush.msrb.mxu0 %v385_v1  ;;  %528 = vmatpush.msrb.mxu3 %v471_v21  ;;  %v430_v60 = vld [vmem:[%s1153_s3 + $0x48] sm:$0xff]  ;;  %v431_v61 = vld [vmem:[%s1153_s3 + $0x50] sm:$0xff]  ;;  %v432_v62 = vld [vmem:[%s1153_s3 + $0x58] sm:$0xff] }
  0x35   : > { %650 = vmatmul.msk.f32.vlgmr.msrb.gmra.mxu0 %vm390_vm1, %v384_v3  ;;  %489 = vmatpush.msrb.mxu1 %v465_v23  ;;  %v425_v63 = vld [vmem:[%s1153_s3 + $0x20] sm:$0xff]  ;;  %v426_v0 = vld [vmem:[%s1153_s3 + $0x28] sm:$0xff]  ;;  %v427_v1 = vld [vmem:[%s1153_s3 + $0x30] sm:$0xff] }
  0x36   : > { %545 = vmatpush.msra.mxu0 %v484_v10  ;;  %509 = vmatpush.msrb.mxu2 %v466_v24  ;;  %v428_v2 = vld [vmem:[%s1153_s3 + $0x38] sm:$0xff]  ;;  %v421_v3 = vld [vmem:[%s1153_s3] sm:$0xff]  ;;  %v422_v4 = vld [vmem:[%s1153_s3 + $0x8] sm:$0xff] }
  0x37   : > { %529 = vmatpush.msrb.mxu3 %v467_v25  ;;  %490 = vmatpush.msrb.mxu1 %v461_v27  ;;  %v423_v5 = vld [vmem:[%s1153_s3 + $0x10] sm:$0xff]  ;;  %v424_v6 = vld [vmem:[%s1153_s3 + $0x18] sm:$0xff] }
  0x38   : > { %546 = vmatpush.msra.mxu0 %v480_v14  ;;  %510 = vmatpush.msrb.mxu2 %v462_v28 }
  0x39   : > { %530 = vmatpush.msrb.mxu3 %v463_v29  ;;  %491 = vmatpush.msrb.mxu1 %v457_v31 }
  0x3a   : > { %547 = vmatpush.msra.mxu0 %v476_v18  ;;  %511 = vmatpush.msrb.mxu2 %v458_v32 }
  0x3b   : > { %531 = vmatpush.msrb.mxu3 %v459_v33  ;;  %492 = vmatpush.msrb.mxu1 %v453_v35 }
  0x3c   : > { %548 = vmatpush.msra.mxu0 %v472_v22  ;;  %512 = vmatpush.msrb.mxu2 %v454_v36 }
  0x3d   : > { %532 = vmatpush.msrb.mxu3 %v455_v37  ;;  %493 = vmatpush.msrb.mxu1 %v449_v39 }
  0x3e   : > { %549 = vmatpush.msra.mxu0 %v468_v26  ;;  %513 = vmatpush.msrb.mxu2 %v450_v40 }
  0x3f   : > { %533 = vmatpush.msrb.mxu3 %v451_v41  ;;  %494 = vmatpush.msrb.mxu1 %v445_v43 }
  0x40   : > { %550 = vmatpush.msra.mxu0 %v464_v30  ;;  %514 = vmatpush.msrb.mxu2 %v446_v44 }
  0x41   : > { %534 = vmatpush.msrb.mxu3 %v447_v45  ;;  %495 = vmatpush.msrb.mxu1 %v441_v47 }
  0x42   : > { %551 = vmatpush.msra.mxu0 %v460_v34  ;;  %515 = vmatpush.msrb.mxu2 %v442_v48 }
  0x43   : > { %535 = vmatpush.msrb.mxu3 %v443_v49  ;;  %340 = vmatmul.f32.vlgmr.msra.gmra.mxu1 %v886_v51 }
  0x44   : > { %552 = vmatpush.msra.mxu0 %v456_v38  ;;  %360 = vmatmul.f32.vlgmr.msra.gmra.mxu2 %v886_v51 }
  0x45   : > { %380 = vmatmul.f32.vlgmr.msra.gmra.mxu3 %v886_v51  ;;  %496 = vmatpush.msrb.mxu1 %v437_v52  ;;  %v433_v51 = vld [vmem:[%s1153_s3 + $0x60] sm:$0xff] }
  0x46   : > { %553 = vmatpush.msra.mxu0 %v452_v42  ;;  %516 = vmatpush.msrb.mxu2 %v438_v53 }
  0x47   : > { %536 = vmatpush.msrb.mxu3 %v439_v54  ;;  %497 = vmatpush.msrb.mxu1 %v433_v51 }
  0x48   : > { %554 = vmatpush.msra.mxu0 %v448_v46  ;;  %517 = vmatpush.msrb.mxu2 %v434_v56 }
  0x49   : > { %537 = vmatpush.msrb.mxu3 %v435_v57  ;;  %498 = vmatpush.msrb.mxu1 %v429_v59 }
  0x4a   : > { %555 = vmatpush.msra.mxu0 %v444_v50  ;;  %518 = vmatpush.msrb.mxu2 %v430_v60 }
  0x4b   : > { %538 = vmatpush.msrb.mxu3 %v431_v61  ;;  %499 = vmatpush.msrb.mxu1 %v425_v63 }
  0x4c   : > { %556 = vmatpush.msra.mxu0 %v440_v55  ;;  %519 = vmatpush.msrb.mxu2 %v426_v0 }
  0x4d   : > { %539 = vmatpush.msrb.mxu3 %v427_v1  ;;  %500 = vmatpush.msrb.mxu1 %v421_v3 }
  0x4e   : > { %557 = vmatpush.msra.mxu0 %v436_v58  ;;  %520 = vmatpush.msrb.mxu2 %v422_v4 }
  0x4f   : > { %540 = vmatpush.msrb.mxu3 %v423_v5 }
  0x50   : > { %558 = vmatpush.msra.mxu0 %v432_v62 }
  0x52   : > { %559 = vmatpush.msra.mxu0 %v428_v2 }
  0x54   : > { %560 = vmatpush.msra.mxu0 %v424_v6 }
  0xa8   : > { %v321_v7 = vpop.f32.mrf.mxu0 }
  0xb2   : > { %v415_v8 = vpop.f32.mrf.mxu0 }
  0xb3   : > { %vm418_vm2 = vcmp.eq.f32.partialorder %v415_v8, 0.0 }
  0xb4   : > { %652 = vmatmul.msk.f32.vlgmr.msrb.gmra.mxu1 %vm418_vm2, %v676_v9  ;;  %653 = vmatmul.msk.f32.vlgmr.msrb.gmra.mxu2 %vm418_vm2, %v676_v9 }
  0xb5   : > { %654 = vmatmul.msk.f32.vlgmr.msrb.gmra.mxu3 %vm418_vm2, %v676_v9  ;;  %655 = vmatmul.msk.f32.vlgmr.msra.gmra.mxu0 %vm418_vm2, %v676_v9 }
  0xc0   : > { %v341_v10 = vpop.f32.mrf.mxu1 }
  0xc7   : > { %v361_v11 = vpop.f32.mrf.mxu2 }
  0xc8   : > { %v381_v12 = vpop.f32.mrf.mxu3 }
 0x131   : > { %v502_v13 = vpop.f32.mrf.mxu1 }
 0x132   : > { %v565_v14 = vmul.f32 %v502_v13, %v321_v7  ;;  %v562_v15 = vpop.f32.mrf.mxu0 }
 0x133   : > { %v568_v16 = vmul.f32 %v562_v15, %v381_v12 }
 0x134   : > { %569 = vst [vmem:[%s238_s22] sm:$0xff] %v565_v14 }
 0x135   : > { %572 = vst [vmem:[%s238_s22 + $0x18] sm:$0xff] %v568_v16 }
 0x137   : > { %v522_v17 = vpop.f32.mrf.mxu2 }
 0x138   : > { %v566_v18 = vmul.f32 %v522_v17, %v341_v10  ;;  %v542_v19 = vpop.f32.mrf.mxu3 }
 0x139   : > { %v567_v20 = vmul.f32 %v542_v19, %v361_v11 }
 0x13a   : > { %570 = vst [vmem:[%s238_s22 + $0x8] sm:$0xff] %v566_v18 }
 0x13b   : > { %571 = vst [vmem:[%s238_s22 + $0x10] sm:$0xff] %v567_v20 }
 0x13c PF: > { %s15_s18 = sadd.s32 1, %s674_s18  }
 0x13d   : > { %p12_p4 = scmp.ge.s32.totalorder %s15_s18, 4  }
 0x13f   :  { %14 = sbr.rel (!%p12_p4) target bundleno = 1 (0x1), region = 73 }

</bundles_post_ra>
